<compile_context>
chip_gen: v5e
topology: v5e:2x2
jax: 0.10.0
libtpu: 0.0.40
codegen_flags: <defaults>
</compile_context>

<pallas_src>
import functools
from math import log

import jax
import jax.numpy as jnp
from jax.experimental import pallas as pl
from jax.experimental.pallas import tpu as pltpu


def _cdiv(a, b):
    return -(-a // b)


def _round_up(x, m):
    return ((x + m - 1) // m) * m


def _device_kind():
    try:
        return jax.devices()[0].device_kind.lower()
    except Exception:  # pragma: no cover - defensive
        return ""


def _hw_config(kind):
    """(per-pred-tile f32-byte budget, vmem_limit_bytes, default num_slices)."""
    if "v7" in kind:                         # 64 MiB physical VMEM, 2 TCs per chip
        return 3 * 1024 * 1024, 40 * 1024 * 1024, 2
    if "v5 lite" in kind or "v5lite" in kind or "v5e" in kind:
        return 12 * 1024 * 1024, 96 * 1024 * 1024, 1   # 128 MiB VMEM, most HBM-bound
    if "v6" in kind:
        return 8 * 1024 * 1024, 64 * 1024 * 1024, 1    # 128 MiB VMEM
    return 4 * 1024 * 1024, 32 * 1024 * 1024, 1        # conservative default


def _pick_tile_n(n, c, budget_bytes):
    """Largest multiple-of-8 row tile whose f32 working set fits budget_bytes.

    Budget is in f32 bytes regardless of input dtype (all intermediates are f32 after
    the in-kernel upcast).  The +512 per row accounts for the lane-padded (tile_n, 1)
    target / accumulator buffers (128 lanes x 4 B).
    """
    per_row = c * 4 + 512
    rows = max(8, budget_bytes // per_row)      # floor of 8 rows; see vocab-scale TODO
    rows = min(rows, _round_up(n, 8))           # no point exceeding the batch
    rows = max(8, (rows // 8) * 8)
    return int(rows)


def _label_smoothing_kernel(pred_ref, tgt_ref, out_ref, *,
                            p, num_classes, c, n_valid, tile_n, tiles_per_slice):
    s = pl.program_id(0)   # batch slice ("parallel": one per TensorCore on v7x)
    i = pl.program_id(1)   # tile within the slice (reduction axis, last in grid)

    @pl.when(i == 0)
    def _():
        out_ref[...] = jnp.zeros_like(out_ref)

    logits = pred_ref[...].astype(jnp.float32)     # (tile_n, C) f32
    tgt = tgt_ref[...]                             # (tile_n, 1) int32

    # Row-wise max and exp-sum; (logits - m) feeds exp directly so Mosaic can fuse the
    # subtract into the exp pass without materializing a full-tile shifted temporary.
    m = jnp.max(logits, axis=-1, keepdims=True)                          # (tile_n, 1)
    sum_exp = jnp.sum(jnp.exp(logits - m), axis=-1, keepdims=True)       # (tile_n, 1)
    lse = jnp.log(sum_exp)                                               # (tile_n, 1)

    # Gather logits at the target class with a hoisted (1, C) iota (no (tile_n, C) iota,
    # no dependence on the max reduce).
    cls_idx = jax.lax.broadcasted_iota(jnp.int32, (1, c), 1)             # (1, C)
    logits_t = jnp.sum(jnp.where(cls_idx == tgt, logits, 0.0),
                       axis=-1, keepdims=True)                           # (tile_n, 1)
    logp_t = logits_t - m - lse                                          # logp at target

    if p == 0.0:
        loss_i = -logp_t
    else:
        # sum_c logp = sum_c logits - C*(m + lse); logp tile never materialized.
        sum_logp = jnp.sum(logits, axis=-1, keepdims=True) - c * (m + lse)
        off = p / (num_classes - 1)
        loss_i = -((1.0 - p) * logp_t + off * (sum_logp - logp_t))

    # Accumulate into the resident (tile_n, 1) output block.  Only ragged / clamped
    # tiles pay for the row mask.
    row0 = (s * tiles_per_slice + i) * tile_n
    full_tile = row0 + tile_n <= n_valid

    @pl.when(full_tile)
    def _():
        out_ref[...] += loss_i

    @pl.when(jnp.logical_not(full_tile))
    def _():
        row_idx = row0 + jax.lax.broadcasted_iota(jnp.int32, (tile_n, 1), 0)
        out_ref[...] += jnp.where(row_idx < n_valid, loss_i, 0.0)


def label_smoothing_loss(pred, target, *, p=0.0, num_classes=None,
                         tile_n=None, num_slices=None):
    """Returns (loss, loss) matching LabelSmoothingLoss.forward (label_noise=False)."""
    n, c = pred.shape
    if num_classes is None:
        num_classes = c
    if not 0.0 <= p < 1.0:
        raise ValueError(f"p must be in [0, 1); got {p}")   # log(1-p), log(p/(C-1)) guard

    minloss = (-(1 - p) * log(1 - p) - p * log(p / (num_classes - 1))) if p > 0 else 0.0

    budget_bytes, vmem_limit, default_slices = _hw_config(_device_kind())

    if tile_n is None:
        tile_n = _pick_tile_n(n, c, budget_bytes)
    if tile_n % 8 != 0:
        raise ValueError("tile_n must be a multiple of 8 (sublane tiling)")

    n_tiles = _cdiv(n, tile_n)
    if num_slices is None:
        num_slices = default_slices
    num_slices = max(1, min(int(num_slices), 2))
    if n_tiles < 2:
        num_slices = 1
    tiles_per_slice = _cdiv(n_tiles, num_slices)
    n_padded = num_slices * tiles_per_slice * tile_n

    # Only the tiny (N,) int target gets padded; pred streams straight from HBM
    # (ragged / clamped tiles are masked inside the kernel).
    target = target.astype(jnp.int32)
    if n_padded != n:
        target = jnp.pad(target, (0, n_padded - n))
    tgt2d = target.reshape(n_padded, 1)

    last_block = n_tiles - 1

    def pred_map(s, i):
        # Clamp so no DMA is issued for a block entirely past the array (the trailing
        # tiles of the second slice); such tiles are fully masked in the kernel.
        t = s * tiles_per_slice + i
        return (jnp.minimum(t, last_block), 0)

    def tgt_map(s, i):
        return (s * tiles_per_slice + i, 0)     # target is padded -> always in bounds

    kernel = functools.partial(
        _label_smoothing_kernel,
        p=float(p), num_classes=int(num_classes), c=int(c), n_valid=int(n),
        tile_n=int(tile_n), tiles_per_slice=int(tiles_per_slice))

    cost = pl.CostEstimate(
        flops=int(7 * n * c),
        transcendentals=int(n * c + 2 * n),
        bytes_accessed=int(n * c * pred.dtype.itemsize + n_padded * 4
                           + num_slices * tile_n * 4))

    partial_sums = pl.pallas_call(
        kernel,
        out_shape=jax.ShapeDtypeStruct((num_slices, tile_n, 1), jnp.float32),
        grid_spec=pltpu.PrefetchScalarGridSpec(
            num_scalar_prefetch=0,
            grid=(num_slices, tiles_per_slice),
            in_specs=[
                pl.BlockSpec((tile_n, c), pred_map),
                pl.BlockSpec((tile_n, 1), tgt_map),
            ],
            out_specs=pl.BlockSpec((None, tile_n, 1), lambda s, i: (s, 0, 0)),
        ),
        compiler_params=pltpu.CompilerParams(
            dimension_semantics=("parallel", "arbitrary"),
            vmem_limit_bytes=int(vmem_limit)),
        cost_estimate=cost,
    )(pred, tgt2d)

    loss = partial_sums.sum() / n - minloss
    return loss, loss


def _reference(pred, target, p, num_classes):
    logp = jax.nn.log_softmax(pred.astype(jnp.float32), axis=-1)
    logp_t = jnp.take_along_axis(logp, target[:, None].astype(jnp.int32), axis=1)[:, 0]
    if p == 0.0:
        return jnp.mean(-logp_t)
    minloss = -(1 - p) * log(1 - p) - p * log(p / (num_classes - 1))
    off = p / (num_classes - 1)
    loss_i = -((1.0 - p) * logp_t + off * (jnp.sum(logp, axis=-1) - logp_t))
    return jnp.mean(loss_i) - minloss


if __name__ == "__main__":
    key = jax.random.PRNGKey(0)
    k1, k2, k3, k4 = jax.random.split(key, 4)

    # --- small demo shape: single tile, auto tile_n ----------------------------------
    N, C = 16, 32
    pred = jax.random.normal(k1, (N, C), dtype=jnp.float32)
    target = jax.random.randint(k2, (N,), 0, C, dtype=jnp.int32)

    loss0, loss0b = label_smoothing_loss(pred, target, p=0.0, num_classes=C)
    jax.block_until_ready(loss0)
    ref0 = _reference(pred, target, 0.0, C)
    assert jnp.allclose(loss0, ref0, atol=1e-5, rtol=1e-5), (loss0, ref0)
    assert jnp.allclose(loss0, loss0b)

    loss1, _ = label_smoothing_loss(pred, target, p=0.1, num_classes=C)
    jax.block_until_ready(loss1)
    ref1 = _reference(pred, target, 0.1, C)
    assert jnp.allclose(loss1, ref1, atol=1e-5, rtol=1e-5), (loss1, ref1)

    # --- non-multiple batch, small tile, forced 2-slice split: exercises multi-tile,
    #     ragged-tile masking and the clamped (fully-OOB) trailing block of slice 1 ----
    N2 = 40
    pred2 = jax.random.normal(k3, (N2, C), dtype=jnp.float32)
    target2 = jax.random.randint(k4, (N2,), 0, C, dtype=jnp.int32)

    loss2, _ = label_smoothing_loss(pred2, target2, p=0.1, num_classes=C,
                                    tile_n=8, num_slices=2)
    jax.block_until_ready(loss2)
    ref2 = _reference(pred2, target2, 0.1, C)
    assert jnp.allclose(loss2, ref2, atol=1e-5, rtol=1e-5), (loss2, ref2)

    # --- bf16 inputs (HBM bytes halved; math stays f32 inside the kernel) -------------
    pred2_bf16 = pred2.astype(jnp.bfloat16)
    loss3, _ = label_smoothing_loss(pred2_bf16, target2, p=0.1, num_classes=C, tile_n=16)
    jax.block_until_ready(loss3)
    ref3 = _reference(pred2_bf16.astype(jnp.float32), target2, 0.1, C)
    assert jnp.allclose(loss3, ref3, atol=1e-5, rtol=1e-5), (loss3, ref3)

    print("KERNEL_OK")
</pallas_src>

<mosaic_0001>
module attributes {stable_mosaic.version = 11 : i64} {
  func.func @_label_smoothing_kernel(%arg0: i32, %arg1: i32, %arg2: memref<16x32xf32, #tpu.memory_space<vmem>>, %arg3: memref<16x1xi32, #tpu.memory_space<vmem>>, %arg4: memref<1x16x1xf32, #tpu.memory_space<vmem>>) attributes {dimension_semantics = [#tpu.dimension_semantics<parallel>, #tpu.dimension_semantics<arbitrary>], iteration_bounds = array<i64: 1, 1>, scalar_prefetch = 0 : i64, scratch_operands = 0 : i64, tpu.core_type = #tpu.core_type<tc>, window_params = [{transform_indices = @transform_0, window_bounds = array<i64: 16, 32>}, {transform_indices = @transform_1, window_bounds = array<i64: 16, 1>}, {transform_indices = @transform_2, window_bounds = array<i64: 1, 16, 1>}]} {
    %c0_i32 = arith.constant 0 : i32
    %0 = arith.cmpi eq, %arg1, %c0_i32 : i32
    %1 = arith.extui %0 : i1 to i32
    %c0_i32_0 = arith.constant 0 : i32
    %2 = arith.cmpi ne, %1, %c0_i32_0 : i32
    scf.if %2 {
      %cst_12 = arith.constant 0.000000e+00 : f32
      %35 = vector.broadcast %cst_12 : f32 to vector<16x1xf32>
      %c0_13 = arith.constant 0 : index
      %c0_14 = arith.constant 0 : index
      %c0_15 = arith.constant 0 : index
      %36 = vector.load %arg4[%c0_13, %c0_14, %c0_15] : memref<1x16x1xf32, #tpu.memory_space<vmem>>, vector<1x16x1xf32>
      %37 = vector.shape_cast %36 : vector<1x16x1xf32> to vector<16x1xf32>
      %38 = vector.shape_cast %35 : vector<16x1xf32> to vector<1x16x1xf32>
      tpu.vector_store %arg4[%c0_13, %c0_14, %c0_15], %38 {strides = array<i32>} : memref<1x16x1xf32, #tpu.memory_space<vmem>>, vector<1x16x1xf32>,
    } else {
    }
    %c0 = arith.constant 0 : index
    %c0_1 = arith.constant 0 : index
    %3 = vector.load %arg2[%c0, %c0_1] : memref<16x32xf32, #tpu.memory_space<vmem>>, vector<16x32xf32>
    %c0_2 = arith.constant 0 : index
    %c0_3 = arith.constant 0 : index
    %4 = vector.load %arg3[%c0_2, %c0_3] : memref<16x1xi32, #tpu.memory_space<vmem>>, vector<16x1xi32>
    %cst = arith.constant dense<0xFF800000> : vector<16xf32>
    %5 = vector.multi_reduction <maximumf>, %3, %cst [1] : vector<16x32xf32> to vector<16xf32>
    %6 = vector.shape_cast %5 : vector<16xf32> to vector<16x1xf32>
    %7 = vector.broadcast %6 : vector<16x1xf32> to vector<16x32xf32>
    %8 = arith.subf %3, %7 : vector<16x32xf32>
    %9 = math.exp %8 : vector<16x32xf32>
    %cst_4 = arith.constant dense<0.000000e+00> : vector<16xf32>
    %10 = vector.multi_reduction <add>, %9, %cst_4 [1] : vector<16x32xf32> to vector<16xf32>
    %11 = vector.shape_cast %10 : vector<16xf32> to vector<16x1xf32>
    %12 = math.log %11 : vector<16x1xf32>
    %13 = tpu.iota {dimensions = array<i32: 1>} : vector<1x32xi32>
    %14 = vector.broadcast %13 : vector<1x32xi32> to vector<16x32xi32>
    %15 = vector.broadcast %4 : vector<16x1xi32> to vector<16x32xi32>
    %16 = arith.cmpi eq, %14, %15 : vector<16x32xi32>
    %cst_5 = arith.constant 0.000000e+00 : f32
    %17 = vector.broadcast %cst_5 : f32 to vector<16x32xf32>
    %18 = arith.select %16, %3, %17 : vector<16x32xi1>, vector<16x32xf32>
    %cst_6 = arith.constant dense<0.000000e+00> : vector<16xf32>
    %19 = vector.multi_reduction <add>, %18, %cst_6 [1] : vector<16x32xf32> to vector<16xf32>
    %20 = vector.shape_cast %19 : vector<16xf32> to vector<16x1xf32>
    %21 = arith.subf %20, %6 : vector<16x1xf32>
    %22 = arith.subf %21, %12 : vector<16x1xf32>
    %cst_7 = arith.constant 0.000000e+00 : f32
    %23 = vector.broadcast %cst_7 : f32 to vector<16x1xf32>
    %24 = arith.subf %23, %22 : vector<16x1xf32>
    %c1_i32 = arith.constant 1 : i32
    %25 = arith.muli %arg0, %c1_i32 : i32
    %26 = arith.addi %25, %arg1 : i32
    %c16_i32 = arith.constant 16 : i32
    %27 = arith.muli %26, %c16_i32 : i32
    %c16_i32_8 = arith.constant 16 : i32
    %28 = arith.addi %27, %c16_i32_8 : i32
    %c16_i32_9 = arith.constant 16 : i32
    %29 = arith.cmpi sle, %28, %c16_i32_9 : i32
    %30 = arith.extui %29 : i1 to i32
    %c0_i32_10 = arith.constant 0 : i32
    %31 = arith.cmpi ne, %30, %c0_i32_10 : i32
    scf.if %31 {
      %c0_12 = arith.constant 0 : index
      %c0_13 = arith.constant 0 : index
      %c0_14 = arith.constant 0 : index
      %35 = vector.load %arg4[%c0_12, %c0_13, %c0_14] : memref<1x16x1xf32, #tpu.memory_space<vmem>>, vector<1x16x1xf32>
      %36 = vector.shape_cast %35 : vector<1x16x1xf32> to vector<16x1xf32>
      %37 = arith.addf %36, %24 : vector<16x1xf32>
      %c0_15 = arith.constant 0 : index
      %c0_16 = arith.constant 0 : index
      %c0_17 = arith.constant 0 : index
      %38 = vector.load %arg4[%c0_15, %c0_16, %c0_17] : memref<1x16x1xf32, #tpu.memory_space<vmem>>, vector<1x16x1xf32>
      %39 = vector.shape_cast %38 : vector<1x16x1xf32> to vector<16x1xf32>
      %40 = vector.shape_cast %37 : vector<16x1xf32> to vector<1x16x1xf32>
      tpu.vector_store %arg4[%c0_15, %c0_16, %c0_17], %40 {strides = array<i32>} : memref<1x16x1xf32, #tpu.memory_space<vmem>>, vector<1x16x1xf32>,
    } else {
    }
    %true = arith.constant true
    %32 = arith.xori %29, %true : i1
    %33 = arith.extui %32 : i1 to i32
    %c0_i32_11 = arith.constant 0 : i32
    %34 = arith.cmpi ne, %33, %c0_i32_11 : i32
    scf.if %34 {
      %35 = tpu.iota {dimensions = array<i32: 0>} : vector<16x1xi32>
      %36 = vector.broadcast %27 : i32 to vector<16x1xi32>
      %37 = arith.addi %36, %35 : vector<16x1xi32>
      %c0_12 = arith.constant 0 : index
      %c0_13 = arith.constant 0 : index
      %c0_14 = arith.constant 0 : index
      %38 = vector.load %arg4[%c0_12, %c0_13, %c0_14] : memref<1x16x1xf32, #tpu.memory_space<vmem>>, vector<1x16x1xf32>
      %39 = vector.shape_cast %38 : vector<1x16x1xf32> to vector<16x1xf32>
      %c16_i32_15 = arith.constant 16 : i32
      %40 = vector.broadcast %c16_i32_15 : i32 to vector<16x1xi32>
      %41 = arith.cmpi slt, %37, %40 : vector<16x1xi32>
      %cst_16 = arith.constant 0.000000e+00 : f32
      %42 = vector.broadcast %cst_16 : f32 to vector<16x1xf32>
      %43 = arith.select %41, %24, %42 : vector<16x1xi1>, vector<16x1xf32>
      %44 = arith.addf %39, %43 : vector<16x1xf32>
      %c0_17 = arith.constant 0 : index
      %c0_18 = arith.constant 0 : index
      %c0_19 = arith.constant 0 : index
      %45 = vector.load %arg4[%c0_17, %c0_18, %c0_19] : memref<1x16x1xf32, #tpu.memory_space<vmem>>, vector<1x16x1xf32>
      %46 = vector.shape_cast %45 : vector<1x16x1xf32> to vector<16x1xf32>
      %47 = vector.shape_cast %44 : vector<16x1xf32> to vector<1x16x1xf32>
      tpu.vector_store %arg4[%c0_17, %c0_18, %c0_19], %47 {strides = array<i32>} : memref<1x16x1xf32, #tpu.memory_space<vmem>>, vector<1x16x1xf32>,
    } else {
    }
    return
  }
  func.func @transform_0(%arg0: i32, %arg1: i32) -> (i32, i32) {
    %c1_i32 = arith.constant 1 : i32
    %0 = arith.muli %arg0, %c1_i32 : i32
    %1 = arith.addi %0, %arg1 : i32
    %c0_i32 = arith.constant 0 : i32
    %2 = arith.minsi %1, %c0_i32 : i32
    %c0_i32_0 = arith.constant 0 : i32
    %c0_i32_1 = arith.constant 0 : i32
    return %2, %c0_i32_0 : i32, i32
  }
  func.func @transform_1(%arg0: i32, %arg1: i32) -> (i32, i32) {
    %c1_i32 = arith.constant 1 : i32
    %0 = arith.muli %arg0, %c1_i32 : i32
    %1 = arith.addi %0, %arg1 : i32
    %c0_i32 = arith.constant 0 : i32
    %c0_i32_0 = arith.constant 0 : i32
    return %1, %c0_i32 : i32, i32
  }
  func.func @transform_2(%arg0: i32, %arg1: i32) -> (i32, i32, i32) {
    %c0_i32 = arith.constant 0 : i32
    %c0_i32_0 = arith.constant 0 : i32
    %c0_i32_1 = arith.constant 0 : i32
    return %arg0, %c0_i32, %c0_i32_0 : i32, i32, i32
  }
}

</mosaic_0001>

<bundles_post_ra>
// kernel: tpu_custom_call.1
= control target key start
LH: loop header
LB: loop body
LE: loop exit
PB: predicated region body
PF: predicated region fallthrough
CT: control target
= control target key end

     0   :  { %vm76_vm0 = vcmask 261120   ;;  %v186_v0 = vmov 0   ;;  %v99_v7 = vlaneseq  ;;  %vm69_vm3 = vcmask 7168   ;;  %s243_s1 = inlined_call_operand.vmem [shape: s32[16,1], index: 1, kind: input, shape index: {}]   ;;  %s244_s0 = inlined_call_operand.vmem [shape: f32[16,32], index: 0, kind: input, shape index: {}]   ;;  %s245_s2 = inlined_call_operand.vmem [shape: f32[1,16,1], index: 2, kind: output, shape index: {}]  }
   0x1   :  { %176 = vset.pattern.permute.xlu1 %v186_v0  ;;  %v74_v1 = vld [vmem:[%s243_s1] sm:$0xff]  ;;  %177 = vset.pattern.permute.xlu0 %v186_v0  ;;  %v73_v4 = vld [vmem:[%s244_s0 + $0x8] sm:$0xff]  ;;  %v187_v25 = vmov 0.0  }
   0x2   :  { %v72_v2 = vld [vmem:[%s244_s0] sm:$0xff]  ;;  %102 = vperm.xlu1 %176, %v74_v1   ;;  %v75_v5 = vld [vmem:[%s243_s1 + $0x8] sm:$0xff]  ;;  %v80_v6 = vsel %vm76_vm0, %v73_v4, -inf  ;;  %v100_v8 = vand.u32 127, %v99_v7  ;;  %70 = vst.msk [vmem:[%s245_s2] sm:$0xff] %vm69_vm3, %v187_v25 }
   0x3   :  { %v77_v3 = vsel %vm76_vm0, %v72_v2, -inf  ;;  %71 = vst.msk [vmem:[%s245_s2 + $0x8] sm:$0xff] %vm69_vm3, %v187_v25 }
   0x4   :  { %78 = vmax.xlane.f32.xlu0 %v77_v3 }
   0x9   :  { %v130_v33 = vld [vmem:[%s245_s2] sm:$0xff] }
   0xa   :  { %105 = vperm.xlu1 %176, %v75_v5   ;;  %v131_v41 = vld [vmem:[%s245_s2 + $0x8] sm:$0xff] }
   0xc   :  { %81 = vmax.xlane.f32.xlu0 %v80_v6 }
  0x74   :  { %v103_v9 = vpop.permute.xlu1 %102 }
  0x75   :  { %vm107_vm1 = vcmp.eq.s32.totalorder %v100_v8, %v103_v9 }
  0x76   :  { %v109_v11 = vsel %vm107_vm1, %v72_v2, 0.0 }
  0x77   :  { %v79_v10 = vpop.xlane.xlu0 %78  ;;  %v111_v13 = vsel %vm76_vm0, %v109_v11, 0.0 }
  0x78   :  { %v83_v12 = vsub.f32 %v72_v2, %v79_v10  ;;  %112 = vadd.xlane.f32.xlu0 %v111_v13 }
  0x7a   :  { %v85_v14 = vmul.f32 1.442695, %v83_v12 }
  0x7c   :  { %178 = vpow2.f32 %v85_v14  ;;  %v106_v15 = vpop.permute.xlu1 %105 }
  0x7d   :  { %vm108_vm2 = vcmp.eq.s32.totalorder %v100_v8, %v106_v15 }
  0x7e   :  { %v110_v17 = vsel %vm108_vm2, %v73_v4, 0.0 }
  0x7f   :  { %v82_v16 = vpop.xlane.xlu0 %81  ;;  %v114_v19 = vsel %vm76_vm0, %v110_v17, 0.0 }
  0x80   :  { %v84_v18 = vsub.f32 %v73_v4, %v82_v16  ;;  %115 = vadd.xlane.f32.xlu1 %v114_v19 }
  0x82   :  { %v179_v20 = vpop.eup %178  ;;  %v87_v21 = vmul.f32 1.442695, %v84_v18 }
  0x83   :  { %v89_v22 = vsel %vm76_vm0, %v179_v20, 0.0 }
  0x84   :  { %180 = vpow2.f32 %v87_v21  ;;  %90 = vadd.xlane.f32.xlu2 %v89_v22 }
  0x8a   :  { %v181_v23 = vpop.eup %180 }
  0x8b   :  { %v92_v24 = vsel %vm76_vm0, %v181_v23, 0.0 }
  0x8c   :  { %93 = vadd.xlane.f32.xlu2 %v92_v24 }
  0xeb   :  { %v113_v27 = vpop.xlane.xlu0 %112 }
  0xec   :  { %v117_v29 = vsub.f32 %v113_v27, %v79_v10 }
  0xf3   :  { %v116_v35 = vpop.xlane.xlu1 %115 }
  0xf4   :  { %v118_v38 = vsub.f32 %v116_v35, %v82_v16 }
  0xf7   :  { %v91_v26 = vpop.xlane.xlu2 %90 }
  0xf8   :  { %182 = vlog2.f32 %v91_v26 }
  0xfe   :  { %v183_v28 = vpop.eup %182 }
  0xff   :  { %v96_v30 = vmul.f32 0.6931472, %v183_v28  ;;  %v94_v31 = vpop.xlane.xlu2 %93 }
 0x100   :  { %184 = vlog2.f32 %v94_v31 }
 0x101   :  { %v119_v32 = vsub.f32 %v117_v29, %v96_v30 }
 0x103   :  { %v121_v34 = vsub.f32 0.0, %v119_v32 }
 0x105   :  { %v132_v36 = vadd.f32 %v130_v33, %v121_v34 }
 0x106   :  { %v185_v37 = vpop.eup %184 }
 0x107   :  { %135 = vst.msk [vmem:[%s245_s2] sm:$0xff] %vm69_vm3, %v132_v36  ;;  %v98_v39 = vmul.f32 0.6931472, %v185_v37 }
 0x109   :  { %v120_v40 = vsub.f32 %v118_v38, %v98_v39 }
 0x10b   :  { %v122_v42 = vsub.f32 0.0, %v120_v40 }
 0x10d   :  { %v133_v43 = vadd.f32 %v131_v41, %v122_v42 }
 0x10f   :  { %136 = vst.msk [vmem:[%s245_s2 + $0x8] sm:$0xff] %vm69_vm3, %v133_v43 }

</bundles_post_ra>
